<compile_context>
chip_gen: v6e
topology: v6e:2x2x1
jax: 0.10.0
libtpu: 0.0.40
codegen_flags: <defaults>
</compile_context>

<pallas_src>
import functools

import jax
import jax.numpy as jnp
from jax.experimental import pallas as pl
from jax.experimental.pallas import tpu as pltpu


# ----------------------------------------------------------------------------- kernel

def _fused_gcn_kernel(a_ref, x_ref, w_ref, b_ref, o_ref, x_scr, *,
                      num_classes, out_f):
    """Grid axis = layer index.  A_norm / activation stay resident in VMEM.

    a_ref : (Np, Np)        bf16   normalized adjacency (same block every step)
    x_ref : (Np, Fp)        bf16   input node features (used only at layer 0)
    w_ref : (1, Fp, Fp)     bf16   this layer's (padded) weight
    b_ref : (1, 1, Fp)      f32    this layer's (padded) bias
    o_ref : (Np, out_f)     f32    final log-softmax output (written on last layer)
    x_scr : (Np, Fp)        bf16   running activation, persists across grid steps
    """
    layer = pl.program_id(0)
    n_layers = pl.num_programs(0)

    @pl.when(layer == 0)
    def _():
        x_scr[...] = x_ref[...]

    # GCNConv: h = A_norm @ (X @ W) + b   (bf16 MXU operands, f32 accumulation)
    xw = jnp.dot(x_scr[...], w_ref[0], preferred_element_type=jnp.float32)
    h = jnp.dot(a_ref[...], xw.astype(jnp.bfloat16),
                preferred_element_type=jnp.float32) + b_ref[0]

    @pl.when(layer < n_layers - 1)
    def _():
        # SiLU: x * sigmoid(x); exp + approx reciprocal both go to the EUP slot.
        sig = pl.reciprocal(1.0 + jnp.exp(-h), approx=True)
        x_scr[...] = (h * sig).astype(x_scr.dtype)

    @pl.when(layer == n_layers - 1)
    def _():
        # log_softmax over the real class lanes only (padded lanes masked out).
        hc = h[:, :out_f]                               # static, lane-aligned slice
        col = jax.lax.broadcasted_iota(jnp.int32, hc.shape, 1)
        hm = jnp.where(col < num_classes, hc, -1e30)
        m = jnp.max(hm, axis=1, keepdims=True)
        s = hm - m
        lse = jnp.log(jnp.sum(jnp.exp(s), axis=1, keepdims=True))
        o_ref[...] = (s - lse).astype(o_ref.dtype)


# ----------------------------------------------------------------------------- wrapper

def _round_up(x, m):
    return (x + m - 1) // m * m


def net_forward(params, a_norm, x):
    """Fused forward pass: one pallas_call for all GCN layers."""
    n, f_in = x.shape
    num_layers = len(params)
    num_classes = params[-1][0].shape[1]

    dims = [f_in] + [w.shape[1] for (w, _) in params]
    lane = 128
    n_pad = _round_up(n, lane)                 # lane-dense rows AND cols of A
    f_pad = _round_up(max(dims), lane)         # lane-dense feature dim, every layer
    out_f = _round_up(num_classes, lane)       # lane-dense output (class) width

    # Pad + cast inputs (zero padding is exact: padded W rows/cols are zero,
    # silu(0) = 0, padded A rows/cols are zero).
    a_pad = jnp.zeros((n_pad, n_pad), jnp.float32).at[:n, :n].set(a_norm)
    a_pad = a_pad.astype(jnp.bfloat16)
    x_pad = jnp.zeros((n_pad, f_pad), jnp.float32).at[:n, :f_in].set(x)
    x_pad = x_pad.astype(jnp.bfloat16)

    w_stack = jnp.zeros((num_layers, f_pad, f_pad), jnp.float32)
    b_stack = jnp.zeros((num_layers, 1, f_pad), jnp.float32)
    for i, (w, b) in enumerate(params):
        w_stack = w_stack.at[i, : w.shape[0], : w.shape[1]].set(w)
        b_stack = b_stack.at[i, 0, : b.shape[1]].set(b[0])
    w_stack = w_stack.astype(jnp.bfloat16)

    # Advisory cost estimate (real, unpadded flop/byte counts).
    flops = 0
    for d_in, d_out in zip(dims[:-1], dims[1:]):
        flops += 2 * n * d_in * d_out + 2 * n * n * d_out
    transcendentals = 2 * n * sum(dims[1:-1]) + n * num_classes
    bytes_accessed = (a_pad.size * 2 + x_pad.size * 2 + w_stack.size * 2
                      + b_stack.size * 4 + n_pad * out_f * 4)

    kernel = functools.partial(_fused_gcn_kernel,
                               num_classes=num_classes, out_f=out_f)
    out_pad = pl.pallas_call(
        kernel,
        out_shape=jax.ShapeDtypeStruct((n_pad, out_f), jnp.float32),
        grid=(num_layers,),
        in_specs=[
            pl.BlockSpec((n_pad, n_pad), lambda l: (0, 0)),        # A_norm (resident)
            pl.BlockSpec((n_pad, f_pad), lambda l: (0, 0)),        # X      (resident)
            pl.BlockSpec((1, f_pad, f_pad), lambda l: (l, 0, 0)),  # W_l    (streamed)
            pl.BlockSpec((1, 1, f_pad), lambda l: (l, 0, 0)),      # b_l    (streamed)
        ],
        out_specs=pl.BlockSpec((n_pad, out_f), lambda l: (0, 0)),
        scratch_shapes=[pltpu.VMEM((n_pad, f_pad), jnp.bfloat16)],
        compiler_params=pltpu.CompilerParams(
            dimension_semantics=("arbitrary",)),  # layers are sequentially dependent
        cost_estimate=pl.CostEstimate(
            flops=int(flops),
            transcendentals=int(transcendentals),
            bytes_accessed=int(bytes_accessed)),
    )(a_pad, x_pad, w_stack, b_stack)

    return out_pad[:n, :num_classes]


# ----------------------------------------------------------------------------- glue

def build_normalized_adjacency(edge_index, num_nodes):
    """Dense D^-1/2 (A + I) D^-1/2 from a [2, E] edge_index (unique edges)."""
    src, dst = edge_index
    a = jnp.zeros((num_nodes, num_nodes), jnp.float32)
    a = a.at[dst, src].add(1.0)                    # aggregate source -> target
    a_hat = a + jnp.eye(num_nodes, dtype=jnp.float32)
    deg = jnp.sum(a_hat, axis=1)
    d_inv_sqrt = jnp.where(deg > 0, 1.0 / jnp.sqrt(deg), 0.0)
    return d_inv_sqrt[:, None] * a_hat * d_inv_sqrt[None, :]


def xavier_uniform(key, fan_in, fan_out):
    limit = jnp.sqrt(6.0 / (fan_in + fan_out)).astype(jnp.float32)
    return jax.random.uniform(key, (fan_in, fan_out), jnp.float32, -limit, limit)


def init_net_params(key, num_features, width, num_classes):
    """Mirrors Net.__init__: GCNConv(num_features, width[0]), chain over width,
    GCNConv(width[-1], num_classes).  Xavier-uniform weights, zero biases."""
    dims = [num_features] + list(width) + [num_classes]
    params = []
    for f_in, f_out in zip(dims[:-1], dims[1:]):
        key, sub = jax.random.split(key)
        w = xavier_uniform(sub, f_in, f_out)
        b = jnp.zeros((1, f_out), jnp.float32)
        params.append((w, b))
    return params


def net_forward_ref(params, a_norm, x):
    """Pure-jnp reference mimicking the kernel's bf16 operand / f32 accum numerics."""
    a = a_norm.astype(jnp.bfloat16)
    for w, b in params[:-1]:
        xw = jnp.dot(x.astype(jnp.bfloat16), w.astype(jnp.bfloat16),
                     preferred_element_type=jnp.float32)
        h = jnp.dot(a, xw.astype(jnp.bfloat16),
                    preferred_element_type=jnp.float32) + b
        x = h * jax.nn.sigmoid(h)
    w, b = params[-1]
    xw = jnp.dot(x.astype(jnp.bfloat16), w.astype(jnp.bfloat16),
                 preferred_element_type=jnp.float32)
    h = jnp.dot(a, xw.astype(jnp.bfloat16), preferred_element_type=jnp.float32) + b
    return jax.nn.log_softmax(h, axis=1)


# ----------------------------------------------------------------------------- main

if __name__ == "__main__":
    key = jax.random.PRNGKey(0)

    num_nodes = 16        # N
    num_features = 8      # datasetroot.num_features
    width = [32, 16]      # hidden widths
    num_classes = 4       # datasetroot.num_classes

    # Deterministic small graph: bidirectional ring over the nodes.
    idx = jnp.arange(num_nodes, dtype=jnp.int32)
    nxt = (idx + 1) % num_nodes
    edge_index = jnp.stack(
        [jnp.concatenate([idx, nxt]), jnp.concatenate([nxt, idx])], axis=0
    )

    key, kx, kp = jax.random.split(key, 3)
    x = jax.random.normal(kx, (num_nodes, num_features), jnp.float32)
    params = init_net_params(kp, num_features, width, num_classes)
    a_norm = build_normalized_adjacency(edge_index, num_nodes)

    out = net_forward(params, a_norm, x)
    out = jax.block_until_ready(out)

    ref = net_forward_ref(params, a_norm, x)
    assert out.shape == (num_nodes, num_classes)
    assert jnp.allclose(out, ref, rtol=1e-2, atol=1e-2), "mismatch vs reference"

    print("KERNEL_OK")
</pallas_src>

<mosaic_0001>
module attributes {stable_mosaic.version = 11 : i64} {
  func.func @_fused_gcn_kernel(%arg0: i32, %arg1: memref<128x128xbf16, #tpu.memory_space<vmem>>, %arg2: memref<128x128xbf16, #tpu.memory_space<vmem>>, %arg3: memref<1x128x128xbf16, #tpu.memory_space<vmem>>, %arg4: memref<1x1x128xf32, #tpu.memory_space<vmem>>, %arg5: memref<128x128xf32, #tpu.memory_space<vmem>>, %arg6: memref<128x128xbf16, #tpu.memory_space<vmem>>) attributes {dimension_semantics = [#tpu.dimension_semantics<arbitrary>], iteration_bounds = array<i64: 3>, scalar_prefetch = 0 : i64, scratch_operands = 1 : i64, tpu.core_type = #tpu.core_type<tc>, window_params = [{pipeline_mode = #tpu.pipeline_mode<synchronous>, transform_indices = @transform_0, window_bounds = array<i64: 128, 128>}, {pipeline_mode = #tpu.pipeline_mode<synchronous>, transform_indices = @transform_1, window_bounds = array<i64: 128, 128>}, {transform_indices = @transform_2, window_bounds = array<i64: 1, 128, 128>}, {transform_indices = @transform_3, window_bounds = array<i64: 1, 1, 128>}, {pipeline_mode = #tpu.pipeline_mode<synchronous>, transform_indices = @transform_4, window_bounds = array<i64: 128, 128>}]} {
    %c0_i32 = arith.constant 0 : i32
    %0 = arith.cmpi eq, %arg0, %c0_i32 : i32
    %1 = arith.extui %0 : i1 to i32
    %c0_i32_0 = arith.constant 0 : i32
    %2 = arith.cmpi ne, %1, %c0_i32_0 : i32
    scf.if %2 {
      %c0_14 = arith.constant 0 : index
      %c0_15 = arith.constant 0 : index
      %20 = vector.load %arg2[%c0_14, %c0_15] : memref<128x128xbf16, #tpu.memory_space<vmem>>, vector<128x128xbf16>
      %c0_16 = arith.constant 0 : index
      %c0_17 = arith.constant 0 : index
      %21 = vector.load %arg6[%c0_16, %c0_17] : memref<128x128xbf16, #tpu.memory_space<vmem>>, vector<128x128xbf16>
      tpu.vector_store %arg6[%c0_16, %c0_17], %20 {strides = array<i32>} : memref<128x128xbf16, #tpu.memory_space<vmem>>, vector<128x128xbf16>,
    } else {
    }
    %c0 = arith.constant 0 : index
    %c0_1 = arith.constant 0 : index
    %3 = vector.load %arg6[%c0, %c0_1] : memref<128x128xbf16, #tpu.memory_space<vmem>>, vector<128x128xbf16>
    %c0_2 = arith.constant 0 : index
    %c0_3 = arith.constant 0 : index
    %c0_4 = arith.constant 0 : index
    %4 = vector.load %arg3[%c0_2, %c0_3, %c0_4] : memref<1x128x128xbf16, #tpu.memory_space<vmem>>, vector<1x128x128xbf16>
    %5 = vector.shape_cast %4 : vector<1x128x128xbf16> to vector<128x128xbf16>
    %cst = arith.constant dense<0.000000e+00> : vector<128x128xf32>
    %6 = tpu.matmul %3, %5, %cst {dimension_numbers = #tpu.dot_dimension_numbers<[1], [0], [0], [1], [0, 0, 1, 1], [], []>} : vector<128x128xbf16>, vector<128x128xbf16>, vector<128x128xf32> -> vector<128x128xf32>
    %c0_5 = arith.constant 0 : index
    %c0_6 = arith.constant 0 : index
    %7 = vector.load %arg1[%c0_5, %c0_6] : memref<128x128xbf16, #tpu.memory_space<vmem>>, vector<128x128xbf16>
    %8 = arith.truncf %6 : vector<128x128xf32> to vector<128x128xbf16>
    %cst_7 = arith.constant dense<0.000000e+00> : vector<128x128xf32>
    %9 = tpu.matmul %7, %8, %cst_7 {dimension_numbers = #tpu.dot_dimension_numbers<[1], [0], [0], [1], [0, 0, 1, 1], [], []>} : vector<128x128xbf16>, vector<128x128xbf16>, vector<128x128xf32> -> vector<128x128xf32>
    %c0_8 = arith.constant 0 : index
    %c0_9 = arith.constant 0 : index
    %c0_10 = arith.constant 0 : index
    %10 = vector.load %arg4[%c0_8, %c0_9, %c0_10] : memref<1x1x128xf32, #tpu.memory_space<vmem>>, vector<1x1x128xf32>
    %11 = vector.shape_cast %10 : vector<1x1x128xf32> to vector<1x128xf32>
    %12 = vector.broadcast %11 : vector<1x128xf32> to vector<128x128xf32>
    %13 = arith.addf %9, %12 : vector<128x128xf32>
    %c2_i32 = arith.constant 2 : i32
    %14 = arith.cmpi slt, %arg0, %c2_i32 : i32
    %15 = arith.extui %14 : i1 to i32
    %c0_i32_11 = arith.constant 0 : i32
    %16 = arith.cmpi ne, %15, %c0_i32_11 : i32
    scf.if %16 {
      %cst_14 = arith.constant 0.000000e+00 : f32
      %20 = vector.broadcast %cst_14 : f32 to vector<128x128xf32>
      %21 = arith.subf %20, %13 : vector<128x128xf32>
      %22 = math.exp %21 : vector<128x128xf32>
      %cst_15 = arith.constant 1.000000e+00 : f32
      %23 = vector.broadcast %cst_15 : f32 to vector<128x128xf32>
      %24 = arith.addf %23, %22 : vector<128x128xf32>
      %25 = tpu.reciprocal %24 {approx = true} : vector<128x128xf32> -> vector<128x128xf32>
      %26 = arith.mulf %13, %25 : vector<128x128xf32>
      %27 = arith.truncf %26 : vector<128x128xf32> to vector<128x128xbf16>
      %c0_16 = arith.constant 0 : index
      %c0_17 = arith.constant 0 : index
      %28 = vector.load %arg6[%c0_16, %c0_17] : memref<128x128xbf16, #tpu.memory_space<vmem>>, vector<128x128xbf16>
      tpu.vector_store %arg6[%c0_16, %c0_17], %27 {strides = array<i32>} : memref<128x128xbf16, #tpu.memory_space<vmem>>, vector<128x128xbf16>,
    } else {
    }
    %c2_i32_12 = arith.constant 2 : i32
    %17 = arith.cmpi eq, %arg0, %c2_i32_12 : i32
    %18 = arith.extui %17 : i1 to i32
    %c0_i32_13 = arith.constant 0 : i32
    %19 = arith.cmpi ne, %18, %c0_i32_13 : i32
    scf.if %19 {
      %20 = tpu.iota {dimensions = array<i32: 1>} : vector<128x128xi32>
      %c4_i32 = arith.constant 4 : i32
      %21 = vector.broadcast %c4_i32 : i32 to vector<128x128xi32>
      %22 = arith.cmpi slt, %20, %21 : vector<128x128xi32>
      %cst_14 = arith.constant -1.000000e+30 : f32
      %23 = vector.broadcast %cst_14 : f32 to vector<128x128xf32>
      %24 = arith.select %22, %13, %23 : vector<128x128xi1>, vector<128x128xf32>
      %cst_15 = arith.constant dense<0xFF800000> : vector<128xf32>
      %25 = vector.multi_reduction <maximumf>, %24, %cst_15 [1] : vector<128x128xf32> to vector<128xf32>
      %26 = vector.shape_cast %25 : vector<128xf32> to vector<128x1xf32>
      %27 = vector.broadcast %26 : vector<128x1xf32> to vector<128x128xf32>
      %28 = arith.subf %24, %27 : vector<128x128xf32>
      %29 = math.exp %28 : vector<128x128xf32>
      %cst_16 = arith.constant dense<0.000000e+00> : vector<128xf32>
      %30 = vector.multi_reduction <add>, %29, %cst_16 [1] : vector<128x128xf32> to vector<128xf32>
      %31 = vector.shape_cast %30 : vector<128xf32> to vector<128x1xf32>
      %32 = math.log %31 : vector<128x1xf32>
      %33 = vector.broadcast %32 : vector<128x1xf32> to vector<128x128xf32>
      %34 = arith.subf %28, %33 : vector<128x128xf32>
      %c0_17 = arith.constant 0 : index
      %c0_18 = arith.constant 0 : index
      %35 = vector.load %arg5[%c0_17, %c0_18] : memref<128x128xf32, #tpu.memory_space<vmem>>, vector<128x128xf32>
      tpu.vector_store %arg5[%c0_17, %c0_18], %34 {strides = array<i32>} : memref<128x128xf32, #tpu.memory_space<vmem>>, vector<128x128xf32>,
    } else {
    }
    return
  }
  func.func @transform_0(%arg0: i32) -> (i32, i32) {
    %c0_i32 = arith.constant 0 : i32
    %c0_i32_0 = arith.constant 0 : i32
    %c0_i32_1 = arith.constant 0 : i32
    return %c0_i32, %c0_i32_0 : i32, i32
  }
  func.func @transform_1(%arg0: i32) -> (i32, i32) {
    %c0_i32 = arith.constant 0 : i32
    %c0_i32_0 = arith.constant 0 : i32
    %c0_i32_1 = arith.constant 0 : i32
    return %c0_i32, %c0_i32_0 : i32, i32
  }
  func.func @transform_2(%arg0: i32) -> (i32, i32, i32) {
    %c0_i32 = arith.constant 0 : i32
    %c0_i32_0 = arith.constant 0 : i32
    %c0_i32_1 = arith.constant 0 : i32
    return %arg0, %c0_i32, %c0_i32_0 : i32, i32, i32
  }
  func.func @transform_3(%arg0: i32) -> (i32, i32, i32) {
    %c0_i32 = arith.constant 0 : i32
    %c0_i32_0 = arith.constant 0 : i32
    %c0_i32_1 = arith.constant 0 : i32
    return %arg0, %c0_i32, %c0_i32_0 : i32, i32, i32
  }
  func.func @transform_4(%arg0: i32) -> (i32, i32) {
    %c0_i32 = arith.constant 0 : i32
    %c0_i32_0 = arith.constant 0 : i32
    %c0_i32_1 = arith.constant 0 : i32
    return %c0_i32, %c0_i32_0 : i32, i32
  }
}

</mosaic_0001>

<bundles_post_ra>
// kernel: tpu_custom_call.1
= control target key start
LH: loop header
LB: loop body
LE: loop exit
PB: predicated region body
PF: predicated region fallthrough
CT: control target
= control target key end

     0   :  { %9 = vsyncpa [#allocation4], 0  ;;  %s2146_s0 = inlined_call_operand.hbm [shape: bf16[128,128], index: 0, kind: input, shape index: {}]   ;;  %s2147_s1 = inlined_call_operand.hbm [shape: bf16[128,128], index: 1, kind: input, shape index: {}]   ;;  %s2148_s2 = inlined_call_operand.hbm [shape: bf16[3,128,128], index: 2, kind: input, shape index: {}]   ;;  %s2149_s3 = inlined_call_operand.vmem [shape: f32[3,1,128], index: 3, kind: input, shape index: {}]   ;;  %s2150_s4 = inlined_call_operand.hbm [shape: f32[128,128], index: 4, kind: output, shape index: {}]  }
   0x1   :  { %10 = vsyncpa [#allocation7], 0 }
   0x2   :  { %11 = vsyncpa [#allocation5], 0  ;;  %s1777_s15 = smov 0   ;;  %s1779_s16 = smov 0  }
   0x3   :  { %s1781_s17 = smov 0   ;;  %s1783_s18 = smov 0  }
   0x4 LB: > { %s1796_s19 = sadd.s32 4294967295, %s1742_s18   ;;  %s1799_s20 = sadd.s32 1, %s1742_s18   ;;  %s1742_s18 = sphi %s1783_s18, %s2169_s18   ;;  %s1738_s17 = sphi %s1781_s17, %s2168_s17   ;;  %s1734_s16 = sphi %s1779_s16, %s2167_s16   ;;  %s1730_s15 = sphi %s1777_s15, %s2166_s15  }
   0x5   : > { %s63_s21 = ssub.s32 %s1742_s18, %s1799_s20  ;;  %s66_s22 = sadd.s32 1, %s1738_s17 }
   0x6   : > { %p64_p0 = scmp.eq.s32.totalorder %s63_s21, 0  ;;  %p73_p1 = scmp.ne.s32.totalorder %s1738_s17, %s1734_s16 }
   0x7   : > { %p74_p2 = scmp.eq.s32.totalorder %s1742_s18, 0  ;;  %p79_p3 = scmp.ne.s32.totalorder %s1734_s16, %s1730_s15 }
   0x8   : > { %s1809_s23 = scalar_select %p64_p0, %s1738_s17, %s66_s22  }
   0x9   : > { %p1811_p4 = por %p74_p2, %p73_p1  ;;  %p2151_p5 = scmp.eq.s32.totalorder %s1796_s19, 0 }
   0xa   : > { %p1150_p6 = scmp.ge.s32.totalorder %s1742_s18, 1  ;;  %p137_p7 = scmp.lt.s32.totalorder %s1742_s18, 4 }
   0xb   : > { %p1820_p8 = por %p2151_p5, %p79_p3  ;;  %s1744_s27 = smov [#allocation3]  }
   0xc   : > { %p1825_p10 = pnand %p1150_p6, %p137_p7  ;;  %s149_s28 = sshll.u32 %s1744_s27, 4  ;;  %s150_s28 = int_to_ptr.vmem [resolvable:$true] %s149_s28 }
   0xd   : > { %s2155_s25 = scalar_select %p1820_p8, 1, 0 }
   0xe   : > { %s2156_s26 = scalar_select %p1825_p10, 1, 0 }
   0xf   : > { %p1383_p11 = pneg %p1825_p10  ;;  %p1396_p13 = scmp.lt.s32.totalorder %s1742_s18, 3 }
  0x10   : > { %s1603_s5 = scalar_lea.vmem %s150_s28, 1024  ;;  %p1611_p7 = scmp.lt.s32.totalorder %s150_s28, %s150_s28 }
  0x11   : > { %p1833_p12 = pnand %p1383_p11, %p2151_p5  ;;  %p1840_p0 = pnand %p1396_p13, %p1811_p4 }
  0x12   : > { %p1604_p2 = scmp.ne.s32.totalorder %s150_s28, %s1603_s5  ;;  %p1612_p11 = scmp.lt.s32.totalorder %s1603_s5, %s1603_s5 }
  0x13   : > { %p1594_p1 = pneg %p1833_p12 }
  0x14   : > { %p1613_p9 = por %p1612_p11, %p1611_p7 }
  0x15   : > { %p1606_p3 = pnand %p1604_p2, %p1594_p1 }
  0x17   : > { %p1607_p6 = pneg %p1606_p3 }
  0x19   : > { %p1614_p5 = pnand %p1613_p9, %p1607_p6 }
  0x1b   : > { %1617 = shalt.err (!%p1614_p5)
}
  0x1c   : > { %s1745_s6 = smov 64   ;;  %s1746_s7 = smov 4  }
  0x1d   : > { %1386 = dma.hbm_to_vmem [thread:$0]  (!%p1833_p12), %s2146_s0, 1024, %s150_s28, [#allocation4], %s1745_s6, %s1745_s6, %s1746_s7  }
  0x1e   : > { %s1747_s10 = smov [#allocation6]   ;;  %s176_s12 = sand.u32 1, %s1742_s18  }
  0x1f   : > { %s162_s11 = sshll.u32 %s1747_s10, 4  ;;  %s163_s11 = int_to_ptr.vmem [resolvable:$true] %s162_s11 }
  0x20   : > { %s1629_s13 = scalar_lea.vmem %s163_s11, 1024  ;;  %p1637_p13 = scmp.lt.s32.totalorder %s163_s11, %s163_s11 }
  0x21   : > { %p1630_p4 = scmp.ne.s32.totalorder %s163_s11, %s1629_s13  ;;  %p1638_p2 = scmp.lt.s32.totalorder %s1629_s13, %s1629_s13 }
  0x23   : > { %p1632_p5 = pnand %p1630_p4, %p1594_p1  ;;  %p1639_p3 = por %p1638_p2, %p1637_p13 }
  0x25   : > { %p1633_p9 = pneg %p1632_p5 }
  0x27   : > { %p1640_p6 = pnand %p1639_p3, %p1633_p9 }
  0x29   : > { %1643 = shalt.err (!%p1640_p6)
}
  0x2a   : > { %1389 = dma.hbm_to_vmem [thread:$0]  (!%p1833_p12), %s2147_s1, 1024, %s163_s11, [#allocation7], %s1745_s6, %s1745_s6, %s1746_s7  }
  0x2b   : > { %s178_s21 = sand.u32 1, %s1738_s17   ;;  %s1209_s22 = sshll.u32 %s1742_s18, 10 }
  0x2c   : > { %s1154_s24 = sshll.u32 %s178_s21, 6  ;;  %s1874_s5 = scalar_lea.hbm %s2148_s2, %s1209_s22 }
  0x2d   : > { %s180_s29 = scalar_lea.vmem [#allocation8], %s1154_s24  ;;  %s1878_s9 = scalar_lea.sflag [#allocation4], %s176_s12 }
  0x2e   : > { %s187_s8 = sshll.u32 %s180_s29, 4  ;;  %s1644_s10 = scalar_lea.hbm %s1874_s5, 1024  ;;  %s1876_s8 = int_to_ptr.vmem [resolvable:$true] %s187_s8 }
  0x2f   : > { %p1645_p1 = scmp.ne.s32.totalorder %s1874_s5, %s1644_s10  ;;  %p1646_p12 = pneg %p1840_p0 }
  0x30   : > { %s1649_s13 = scalar_lea.hbm %s2148_s2, 3072  ;;  %p1650_p4 = scmp.lt.s32.totalorder %s1874_s5, %s2148_s2 }
  0x31   : > { %p1647_p7 = pnand %p1646_p12, %p1645_p1  ;;  %p1651_p5 = scmp.lt.s32.totalorder %s1649_s13, %s1644_s10 }
  0x33   : > { %p1648_p11 = pneg %p1647_p7  ;;  %p1652_p9 = por %p1651_p5, %p1650_p4 }
  0x35   : > { %p1653_p13 = pnand %p1652_p9, %p1648_p11 }
  0x37   : > { %1656 = shalt.err (!%p1653_p13)
}
  0x38   : > { %s1657_s12 = scalar_lea.vmem %s1876_s8, 1024  ;;  %s1748_s21 = smov [#allocation8]  }
  0x39   : > { %p1658_p2 = scmp.ne.s32.totalorder %s1876_s8, %s1657_s12  ;;  %s1662_s22 = sshll.u32 %s1748_s21, 4  ;;  %s1663_s22 = int_to_ptr.vmem [resolvable:$false] %s1662_s22 }
  0x3a   : > { %s1664_s24 = scalar_lea.vmem %s1663_s22, 2048  ;;  %p1665_p1 = scmp.lt.s32.totalorder %s1876_s8, %s1663_s22 }
  0x3b   : > { %p1660_p3 = pnand %p1658_p2, %p1646_p12  ;;  %p1666_p7 = scmp.lt.s32.totalorder %s1664_s24, %s1657_s12 }
  0x3d   : > { %p1661_p6 = pneg %p1660_p3  ;;  %p1667_p8 = por %p1666_p7, %p1665_p1 }
  0x3f   : > { %p1668_p10 = pnand %p1667_p8, %p1661_p6 }
  0x41   : > { %1671 = shalt.err (!%p1668_p10)
}
  0x42   : > { %1393 = dma.hbm_to_vmem [thread:$0]  (!%p1840_p0), %s1874_s5, 1024, %s1876_s8, %s1878_s9, %s1745_s6, %s1745_s6, %s1746_s7  }
  0x43   : > { %p2159_p12 = scmp.ne.s32.totalorder %s2156_s26, 0 }
  0x44   : > { %p2160_p11 = scmp.eq.s32.totalorder (!%p2159_p12), %s1796_s19, 0 }
  0x45   : > { %205 = sbr.rel (%p2159_p12) target bundleno = 1037 (0x40d), region = 36 }
  0x4a   : > { %1713 = dma.done.wait (%p2160_p11), [#allocation4], 1024   ;;  %p2161_p4 = pmov %p2160_p11 }
  0x4c   : > { %1715 = vsyncadd (%p2161_p4), [#allocation4], 4294966272  ;;  %p2162_p8 = pmov %p2161_p4 }
  0x4d   : > { %p2163_p10 = pmov %p2161_p4 }
  0x4e   : > { %1717 = dma.done.wait (%p2162_p8), [#allocation7], 1024  }
  0x4f   : > { %1719 = vsyncadd (%p2163_p10), [#allocation7], 4294966272  ;;  %s215_s30 = sand.u32 1, %s1796_s19   ;;  %s217_s6 = sand.u32 1, %s1734_s16  }
  0x50   : > { %s1160_s7 = sshll.u32 %s217_s6, 6  ;;  %s216_s26 = scalar_lea.sflag [#allocation4], %s215_s30 }
  0x51   : > { %s1914_s27 = scalar_lea.vmem [#allocation8], %s1160_s7  ;;  %p2164_p0 = scmp.ne.s32.totalorder %s2155_s25, 0 }
  0x53   : > { %1721 = dma.done.wait (%p2164_p0), %s216_s26, 1024  }
  0x54   : > { %1723 = vsyncadd (%p2164_p0), %s216_s26, 4294966272  ;;  %p242_p5 = scmp.lt.s32.totalorder %s1796_s19, 2  ;;  %p2165_p9 = scmp.ne.s32.totalorder %s1796_s19, 0 }
  0x56   : > { %s1922_s28 = scalar_select %p242_p5, %s1796_s19, 2 }
  0x57   : > { %249 = sbr.rel (%p2165_p9) target bundleno = 97 (0x61), region = 52 }
  0x58   : > { %s244_s8 = scalar_lea.vmem %s2149_s3, %s1922_s28 }
  0x5c   : > { %v250_v0 = vld [vmem:[#allocation6] sm:$0xff]   ;;  %v252_v1 = vld [vmem:[#allocation6 + $0x8] sm:$0xff]   ;;  %v254_v2 = vld [vmem:[#allocation6 + $0x10] sm:$0xff]  }
  0x5d   : > { %266 = vst [vmem:[#allocation2] sm:$0xff] %v250_v0   ;;  %268 = vst [vmem:[#allocation2 + $0x8] sm:$0xff] %v252_v1   ;;  %v256_v3 = vld [vmem:[#allocation6 + $0x18] sm:$0xff]   ;;  %v258_v4 = vld [vmem:[#allocation6 + $0x20] sm:$0xff]  }
  0x5e   : > { %270 = vst [vmem:[#allocation2 + $0x10] sm:$0xff] %v254_v2   ;;  %v260_v5 = vld [vmem:[#allocation6 + $0x28] sm:$0xff]   ;;  %272 = vst [vmem:[#allocation2 + $0x18] sm:$0xff] %v256_v3   ;;  %v262_v6 = vld [vmem:[#allocation6 + $0x30] sm:$0xff]  }
  0x5f   : > { %274 = vst [vmem:[#allocation2 + $0x20] sm:$0xff] %v258_v4   ;;  %276 = vst [vmem:[#allocation2 + $0x28] sm:$0xff] %v260_v5   ;;  %v264_v7 = vld [vmem:[#allocation6 + $0x38] sm:$0xff]  }
  0x60   : > { %278 = vst [vmem:[#allocation2 + $0x30] sm:$0xff] %v262_v6   ;;  %280 = vst [vmem:[#allocation2 + $0x38] sm:$0xff] %v264_v7  }
  0x61 PF: > { %v1440_v8 = vld [vmem:[%s1914_s27 + $0x38] sm:$0xff]   ;;  %v1441_v9 = vld [vmem:[%s1914_s27 + $0x30] sm:$0xff]   ;;  %v1442_v10 = vld [vmem:[%s1914_s27 + $0x28] sm:$0xff]   ;;  %p1187_p13 = scmp.ge.s32.totalorder %s1796_s19, 2 }
  0x62   : > { %1305 = vmatprep.subr.bf16.mxu0 %v1440_v8  ;;  %v1443_v11 = vld [vmem:[%s1914_s27 + $0x20] sm:$0xff]   ;;  %v1444_v13 = vld [vmem:[%s1914_s27 + $0x18] sm:$0xff]   ;;  %v1445_v14 = vld [vmem:[%s1914_s27 + $0x10] sm:$0xff]  }
  0x63   : > { %1306 = vmatpush3.bf16.msra.mxu0 %v1440_v8  ;;  %v1446_v15 = vld [vmem:[%s1914_s27 + $0x8] sm:$0xff]   ;;  %v1447_v16 = vld [vmem:[%s1914_s27] sm:$0xff]   ;;  %v1458_v50 = vld [vmem:[#allocation3 + $0x10] sm:$0xff]  }
  0x64   : > { %1307 = vmatprep.subr.bf16.mxu0 %v1441_v9  ;;  %v1448_v12 = vld [vmem:[#allocation2] sm:$0xff]   ;;  %v1449_v17 = vld [vmem:[#allocation2 + $0x8] sm:$0xff]   ;;  %v1459_v51 = vld [vmem:[#allocation3 + $0x18] sm:$0xff]  }
  0x65   : > { %1321 = vmatprep.mubr.bf16.mxu0 %v1448_v12  ;;  %v1450_v18 = vld [vmem:[#allocation2 + $0x10] sm:$0xff]   ;;  %v1451_v19 = vld [vmem:[#allocation2 + $0x18] sm:$0xff]   ;;  %v1456_v24 = vld [vmem:[#allocation3] sm:$0xff]  }
  0x66   : > { %v1452_v20 = vld [vmem:[#allocation2 + $0x20] sm:$0xff]   ;;  %v1453_v21 = vld [vmem:[#allocation2 + $0x28] sm:$0xff]   ;;  %1353 = vmatprep.mubr.bf16.mxu1 %v1456_v24  ;;  %v1462_v54 = vld [vmem:[#allocation3 + $0x30] sm:$0xff]  }
  0x67   : > { %1308 = vmatpush3.bf16.msra.mxu0 %v1441_v9  ;;  %v1454_v22 = vld [vmem:[#allocation2 + $0x30] sm:$0xff]   ;;  %v1455_v23 = vld [vmem:[#allocation2 + $0x38] sm:$0xff]   ;;  %v1457_v49 = vld [vmem:[#allocation3 + $0x8] sm:$0xff]  }
  0x68   : > { %1309 = vmatprep.subr.bf16.mxu0 %v1442_v10  ;;  %v1460_v52 = vld [vmem:[#allocation3 + $0x20] sm:$0xff]   ;;  %v1461_v53 = vld [vmem:[#allocation3 + $0x28] sm:$0xff]   ;;  %v1463_v55 = vld [vmem:[#allocation3 + $0x38] sm:$0xff]  }
  0x69   : > { %v1178_v56 = vld [vmem:[%s244_s8] ss:$0 sm:$0xff] }
  0x6b   : > { %1310 = vmatpush3.bf16.msra.mxu0 %v1442_v10 }
  0x6c   : > { %1311 = vmatprep.subr.bf16.mxu0 %v1443_v11 }
  0x6f   : > { %1312 = vmatpush3.bf16.msra.mxu0 %v1443_v11 }
  0x70   : > { %1313 = vmatprep.subr.bf16.mxu0 %v1444_v13 }
  0x73   : > { %1314 = vmatpush3.bf16.msra.mxu0 %v1444_v13 }
  0x74   : > { %1315 = vmatprep.subr.bf16.mxu0 %v1445_v14 }
  0x77   : > { %1316 = vmatpush3.bf16.msra.mxu0 %v1445_v14 }
  0x78   : > { %1317 = vmatprep.subr.bf16.mxu0 %v1446_v15 }
  0x7b   : > { %1318 = vmatpush3.bf16.msra.mxu0 %v1446_v15 }
  0x7c   : > { %1319 = vmatprep.subr.bf16.mxu0 %v1447_v16 }
  0x7f   : > { %1320 = vmatpush3.bf16.msra.mxu0 %v1447_v16 }
  0x82   : > { %1322 = vmatmul.mubr.bf16.vlgmr.msra.gmra.mxu0 %v1449_v17 }
  0x83   : > { %1325 = vmatprep.mubr.bf16.mxu0 %v1450_v18 }
  0x8a   : > { %1326 = vmatmul.mubr.bf16.gmra.mxu0 %v1451_v19 }
  0x8b   : > { %1329 = vmatprep.mubr.bf16.mxu0 %v1452_v20 }
  0x92   : > { %1330 = vmatmul.mubr.bf16.gmra.mxu0 %v1453_v21 }
  0x93   : > { %1333 = vmatprep.mubr.bf16.mxu0 %v1454_v22 }
  0x9a   : > { %1334 = vmatmul.mubr.bf16.gmra.mxu0 %v1455_v23 }
 0x142   : > { %v1323_v25 = vpop.f32.mrf.mxu0 }
 0x144   : > { %v444_v26 = vpop.f32.mrf.mxu0 }
 0x146   : > { %v1324_v27 = vpop.f32.mrf.mxu0 }
 0x147   : > { %v524_v47 = vpack.c.bf16 %v1324_v27, %v1323_v25 }
 0x148   : > { %v447_v28 = vpop.f32.mrf.mxu0 }
 0x149   : > { %v523_v48 = vpack.c.bf16 %v447_v28, %v444_v26 }
 0x14a   : > { %v1327_v29 = vpop.f32.mrf.mxu0 }
 0x14c   : > { %v460_v30 = vpop.f32.mrf.mxu0 }
 0x14e   : > { %v1328_v31 = vpop.f32.mrf.mxu0 }
 0x14f   : > { %v526_v45 = vpack.c.bf16 %v1328_v31, %v1327_v29 }
 0x150   : > { %v463_v32 = vpop.f32.mrf.mxu0 }
 0x151   : > { %v525_v46 = vpack.c.bf16 %v463_v32, %v460_v30 }
 0x152   : > { %v1331_v33 = vpop.f32.mrf.mxu0 }
 0x154   : > { %v476_v34 = vpop.f32.mrf.mxu0 }
 0x156   : > { %v1332_v35 = vpop.f32.mrf.mxu0 }
 0x157   : > { %v528_v43 = vpack.c.bf16 %v1332_v35, %v1331_v33 }
 0x158   : > { %v479_v36 = vpop.f32.mrf.mxu0 }
 0x159   : > { %v527_v44 = vpack.c.bf16 %v479_v36, %v476_v34 }
 0x15a   : > { %v1335_v37 = vpop.f32.mrf.mxu0 }
 0x15c   : > { %v492_v38 = vpop.f32.mrf.mxu0 }
 0x15e   : > { %v1336_v39 = vpop.f32.mrf.mxu0 }
 0x15f   : > { %v530_v40 = vpack.c.bf16 %v1336_v39, %v1335_v37 }
 0x160   : > { %v495_v41 = vpop.f32.mrf.mxu0 }
 0x161   : > { %v529_v42 = vpack.c.bf16 %v495_v41, %v492_v38  ;;  %1337 = vmatprep.subr.bf16.mxu1 %v530_v40 }
 0x162   : > { %1338 = vmatpush3.bf16.msra.mxu1 %v530_v40 }
 0x163   : > { %1339 = vmatprep.subr.bf16.mxu1 %v529_v42 }
 0x166   : > { %1340 = vmatpush3.bf16.msra.mxu1 %v529_v42 }
 0x167   : > { %1341 = vmatprep.subr.bf16.mxu1 %v528_v43 }
 0x16a   : > { %1342 = vmatpush3.bf16.msra.mxu1 %v528_v43 }
 0x16b   : > { %1343 = vmatprep.subr.bf16.mxu1 %v527_v44 }
 0x16e   : > { %1344 = vmatpush3.bf16.msra.mxu1 %v527_v44 }
 0x16f   : > { %1345 = vmatprep.subr.bf16.mxu1 %v526_v45 }
 0x172   : > { %1346 = vmatpush3.bf16.msra.mxu1 %v526_v45 }
 0x173   : > { %1347 = vmatprep.subr.bf16.mxu1 %v525_v46 }
 0x176   : > { %1348 = vmatpush3.bf16.msra.mxu1 %v525_v46 }
 0x177   : > { %1349 = vmatprep.subr.bf16.mxu1 %v524_v47 }
 0x17a   : > { %1350 = vmatpush3.bf16.msra.mxu1 %v524_v47 }
 0x17b   : > { %1351 = vmatprep.subr.bf16.mxu1 %v523_v48 }
 0x17e   : > { %1352 = vmatpush3.bf16.msra.mxu1 %v523_v48 }
 0x181   : > { %1354 = vmatmul.mubr.bf16.vlgmr.msra.gmra.mxu1 %v1457_v49 }
 0x182   : > { %1357 = vmatprep.mubr.bf16.mxu1 %v1458_v50 }
 0x189   : > { %1358 = vmatmul.mubr.bf16.gmra.mxu1 %v1459_v51 }
 0x18a   : > { %1361 = vmatprep.mubr.bf16.mxu1 %v1460_v52 }
 0x191   : > { %1362 = vmatmul.mubr.bf16.gmra.mxu1 %v1461_v53 }
 0x192   : > { %1365 = vmatprep.mubr.bf16.mxu1 %v1462_v54 }
 0x199   : > { %1366 = vmatmul.mubr.bf16.gmra.mxu1 %v1463_v55 }
 0x241   : > { %v1355_v57 = vpop.f32.mrf.mxu1 }
 0x242   : > { %v1943_v58 = vadd.f32 %v1355_v57, %v1178_v56 }
 0x243   : > { %v620_v59 = vpop.f32.mrf.mxu1 }
 0x244   : > { %v1945_v60 = vadd.f32 %v1178_v56, %v620_v59 }
 0x245   : > { %v1356_v61 = vpop.f32.mrf.mxu1 }
 0x246   : > { %v1947_v62 = vadd.f32 %v1356_v61, %v1178_v56 }
 0x247   : > { %v623_v63 = vpop.f32.mrf.mxu1 }
 0x248   : > { %v1949_v0 = vadd.f32 %v1178_v56, %v623_v63 }
 0x249   : > { %v1359_v1 = vpop.f32.mrf.mxu1 }
 0x24a   : > { %v1951_v2 = vadd.f32 %v1359_v1, %v1178_v56 }
 0x24b   : > { %v636_v3 = vpop.f32.mrf.mxu1 }
 0x24c   : > { %v1953_v4 = vadd.f32 %v1178_v56, %v636_v3 }
 0x24d   : > { %v1360_v5 = vpop.f32.mrf.mxu1 }
 0x24e   : > { %v1955_v6 = vadd.f32 %v1360_v5, %v1178_v56 }
 0x24f   : > { %v639_v7 = vpop.f32.mrf.mxu1 }
 0x250   : > { %v1957_v8 = vadd.f32 %v1178_v56, %v639_v7 }
 0x251   : > { %v1363_v9 = vpop.f32.mrf.mxu1 }
 0x252   : > { %v1959_v10 = vadd.f32 %v1363_v9, %v1178_v56 }
 0x253   : > { %v652_v11 = vpop.f32.mrf.mxu1 }
 0x254   : > { %v1961_v12 = vadd.f32 %v1178_v56, %v652_v11 }
 0x255   : > { %v1364_v13 = vpop.f32.mrf.mxu1 }
 0x256   : > { %v1963_v14 = vadd.f32 %v1364_v13, %v1178_v56 }
 0x257   : > { %v655_v15 = vpop.f32.mrf.mxu1 }
 0x258   : > { %v1965_v16 = vadd.f32 %v1178_v56, %v655_v15 }
 0x259   : > { %v1367_v17 = vpop.f32.mrf.mxu1 }
 0x25a   : > { %v1967_v18 = vadd.f32 %v1367_v17, %v1178_v56 }
 0x25b   : > { %v668_v19 = vpop.f32.mrf.mxu1 }
 0x25c   : > { %v1969_v20 = vadd.f32 %v1178_v56, %v668_v19  ;;  %686 = sbr.rel (%p1187_p13) target bundleno = 663 (0x297), region = 56 }
 0x25d   : > { %v1368_v21 = vpop.f32.mrf.mxu1 }
 0x25e   : > { %v1971_v22 = vadd.f32 %v1368_v21, %v1178_v56 }
 0x25f   : > { %v671_v23 = vpop.f32.mrf.mxu1 }
 0x260   : > { %v1973_v24 = vadd.f32 %v1178_v56, %v671_v23 }
 0x261   : > { %v687_v25 = vsub.f32 0.0, %v1945_v60  ;;  %v688_v26 = vsub.f32 0.0, %v1949_v0  ;;  %v689_v27 = vsub.f32 0.0, %v1943_v58  ;;  %v690_v28 = vsub.f32 0.0, %v1947_v62 }
 0x262   : > { %v691_v29 = vsub.f32 0.0, %v1953_v4  ;;  %v692_v30 = vsub.f32 0.0, %v1957_v8  ;;  %v693_v31 = vsub.f32 0.0, %v1951_v2  ;;  %v694_v36 = vsub.f32 0.0, %v1955_v6 }
 0x263   : > { %v703_v32 = vmul.f32 1.442695, %v687_v25  ;;  %v705_v33 = vmul.f32 1.442695, %v688_v26  ;;  %v707_v34 = vmul.f32 1.442695, %v689_v27 }
 0x264   : > { %v709_v35 = vmul.f32 1.442695, %v690_v28  ;;  %v711_v37 = vmul.f32 1.442695, %v691_v29  ;;  %v695_v38 = vsub.f32 0.0, %v1961_v12  ;;  %v696_v40 = vsub.f32 0.0, %v1965_v16 }
 0x265   : > { %1464 = vpow2.f32 %v703_v32  ;;  %v713_v39 = vmul.f32 1.442695, %v692_v30  ;;  %v715_v41 = vmul.f32 1.442695, %v693_v31  ;;  %v697_v42 = vsub.f32 0.0, %v1959_v10 }
 0x266   : > { %1466 = vpow2.f32 %v705_v33  ;;  %v717_v43 = vmul.f32 1.442695, %v694_v36  ;;  %v698_v44 = vsub.f32 0.0, %v1963_v14  ;;  %v719_v45 = vmul.f32 1.442695, %v695_v38 }
 0x267   : > { %1468 = vpow2.f32 %v707_v34  ;;  %v699_v46 = vsub.f32 0.0, %v1969_v20  ;;  %v721_v47 = vmul.f32 1.442695, %v696_v40  ;;  %v700_v48 = vsub.f32 0.0, %v1973_v24 }
 0x268   : > { %1470 = vpow2.f32 %v709_v35  ;;  %v723_v49 = vmul.f32 1.442695, %v697_v42  ;;  %v701_v50 = vsub.f32 0.0, %v1967_v18  ;;  %v725_v51 = vmul.f32 1.442695, %v698_v44 }
 0x269   : > { %1472 = vpow2.f32 %v711_v37  ;;  %v702_v52 = vsub.f32 0.0, %v1971_v22  ;;  %v727_v53 = vmul.f32 1.442695, %v699_v46  ;;  %v729_v54 = vmul.f32 1.442695, %v700_v48 }
 0x26a   : > { %1474 = vpow2.f32 %v713_v39  ;;  %v731_v55 = vmul.f32 1.442695, %v701_v50 }
 0x26b   : > { %1476 = vpow2.f32 %v715_v41  ;;  %v733_v56 = vmul.f32 1.442695, %v702_v52 }
 0x26c   : > { %1478 = vpow2.f32 %v717_v43 }
 0x26d   : > { %1480 = vpow2.f32 %v719_v45 }
 0x26e   : > { %1482 = vpow2.f32 %v721_v47 }
 0x26f   : > { %1484 = vpow2.f32 %v723_v49 }
 0x270   : > { %1486 = vpow2.f32 %v725_v51 }
 0x271   : > { %1488 = vpow2.f32 %v727_v53 }
 0x272   : > { %v1465_v57 = vpop.eup %1464  ;;  %1490 = vpow2.f32 %v729_v54 }
 0x273   : > { %v1467_v59 = vpop.eup %1466  ;;  %v735_v61 = vadd.f32 1.0, %v1465_v57  ;;  %1492 = vpow2.f32 %v731_v55 }
 0x274   : > { %v1469_v63 = vpop.eup %1468  ;;  %v736_v1 = vadd.f32 1.0, %v1467_v59  ;;  %1494 = vpow2.f32 %v733_v56 }
 0x275   : > { %v1471_v3 = vpop.eup %1470  ;;  %1496 = vrcp.f32 %v735_v61  ;;  %v737_v5 = vadd.f32 1.0, %v1469_v63 }
 0x276   : > { %v1473_v7 = vpop.eup %1472  ;;  %1498 = vrcp.f32 %v736_v1  ;;  %v738_v9 = vadd.f32 1.0, %v1471_v3 }
 0x277   : > { %v1475_v11 = vpop.eup %1474  ;;  %1500 = vrcp.f32 %v737_v5  ;;  %v739_v13 = vadd.f32 1.0, %v1473_v7 }
 0x278   : > { %v1477_v15 = vpop.eup %1476  ;;  %1502 = vrcp.f32 %v738_v9  ;;  %v740_v17 = vadd.f32 1.0, %v1475_v11 }
 0x279   : > { %v1479_v19 = vpop.eup %1478  ;;  %1504 = vrcp.f32 %v739_v13  ;;  %v741_v21 = vadd.f32 1.0, %v1477_v15 }
 0x27a   : > { %v1481_v23 = vpop.eup %1480  ;;  %1506 = vrcp.f32 %v740_v17  ;;  %v742_v25 = vadd.f32 1.0, %v1479_v19 }
 0x27b   : > { %v1483_v26 = vpop.eup %1482  ;;  %1508 = vrcp.f32 %v741_v21  ;;  %v743_v27 = vadd.f32 1.0, %v1481_v23 }
 0x27c   : > { %v1485_v28 = vpop.eup %1484  ;;  %1510 = vrcp.f32 %v742_v25  ;;  %v744_v29 = vadd.f32 1.0, %v1483_v26 }
 0x27d   : > { %v1487_v30 = vpop.eup %1486  ;;  %1512 = vrcp.f32 %v743_v27  ;;  %v745_v31 = vadd.f32 1.0, %v1485_v28 }
 0x27e   : > { %v1489_v32 = vpop.eup %1488  ;;  %1514 = vrcp.f32 %v744_v29  ;;  %v746_v33 = vadd.f32 1.0, %v1487_v30 }
 0x27f   : > { %v1491_v34 = vpop.eup %1490  ;;  %1516 = vrcp.f32 %v745_v31  ;;  %v747_v35 = vadd.f32 1.0, %v1489_v32 }
 0x280   : > { %v1493_v36 = vpop.eup %1492  ;;  %1518 = vrcp.f32 %v746_v33  ;;  %v748_v37 = vadd.f32 1.0, %v1491_v34 }
 0x281   : > { %v1495_v38 = vpop.eup %1494  ;;  %1520 = vrcp.f32 %v747_v35  ;;  %v749_v39 = vadd.f32 1.0, %v1493_v36 }
 0x282   : > { %v1497_v40 = vpop.eup %1496  ;;  %1522 = vrcp.f32 %v748_v37  ;;  %v750_v41 = vadd.f32 1.0, %v1495_v38 }
 0x283   : > { %v1499_v42 = vpop.eup %1498  ;;  %v767_v43 = vmul.f32 %v1497_v40, %v1945_v60  ;;  %1524 = vrcp.f32 %v749_v39 }
 0x284   : > { %v1501_v44 = vpop.eup %1500  ;;  %v768_v45 = vmul.f32 %v1499_v42, %v1949_v0  ;;  %1526 = vrcp.f32 %v750_v41 }
 0x285   : > { %v1503_v46 = vpop.eup %1502  ;;  %v769_v47 = vmul.f32 %v1501_v44, %v1943_v58 }
 0x286   : > { %v1505_v48 = vpop.eup %1504  ;;  %v1229_v49 = vpack.c.bf16 %v768_v45, %v767_v43  ;;  %v770_v50 = vmul.f32 %v1503_v46, %v1947_v62 }
 0x287   : > { %v1507_v51 = vpop.eup %1506  ;;  %v771_v52 = vmul.f32 %v1505_v48, %v1953_v4 }
 0x288   : > { %v1509_v53 = vpop.eup %1508  ;;  %1230 = vst [vmem:[#allocation2] sm:$0xff] %v1229_v49   ;;  %v1234_v54 = vpack.c.bf16 %v770_v50, %v769_v47  ;;  %v772_v55 = vmul.f32 %v1507_v51, %v1957_v8 }
 0x289   : > { %v1511_v56 = vpop.eup %1510  ;;  %v773_v57 = vmul.f32 %v1509_v53, %v1951_v2 }
 0x28a   : > { %v1513_v59 = vpop.eup %1512  ;;  %1266 = vst [vmem:[#allocation2 + $0x8] sm:$0xff] %v1234_v54   ;;  %v1239_v61 = vpack.c.bf16 %v772_v55, %v771_v52  ;;  %v774_v63 = vmul.f32 %v1511_v56, %v1955_v6 }
 0x28b   : > { %v1515_v1 = vpop.eup %1514  ;;  %v775_v3 = vmul.f32 %v1513_v59, %v1961_v12 }
 0x28c   : > { %v1517_v5 = vpop.eup %1516  ;;  %1267 = vst [vmem:[#allocation2 + $0x10] sm:$0xff] %v1239_v61   ;;  %v1244_v7 = vpack.c.bf16 %v774_v63, %v773_v57  ;;  %v776_v9 = vmul.f32 %v1515_v1, %v1965_v16 }
 0x28d   : > { %v1519_v11 = vpop.eup %1518  ;;  %v777_v13 = vmul.f32 %v1517_v5, %v1959_v10 }
 0x28e   : > { %v1521_v15 = vpop.eup %1520  ;;  %1268 = vst [vmem:[#allocation2 + $0x18] sm:$0xff] %v1244_v7   ;;  %v1249_v17 = vpack.c.bf16 %v776_v9, %v775_v3  ;;  %v778_v19 = vmul.f32 %v1519_v11, %v1963_v14 }
 0x28f   : > { %v1523_v21 = vpop.eup %1522  ;;  %v779_v23 = vmul.f32 %v1521_v15, %v1969_v20 }
 0x290   : > { %v1525_v25 = vpop.eup %1524  ;;  %1269 = vst [vmem:[#allocation2 + $0x20] sm:$0xff] %v1249_v17   ;;  %v1254_v26 = vpack.c.bf16 %v778_v19, %v777_v13  ;;  %v780_v27 = vmul.f32 %v1523_v21, %v1973_v24 }
 0x291   : > { %v1527_v28 = vpop.eup %1526  ;;  %v781_v29 = vmul.f32 %v1525_v25, %v1967_v18 }
 0x292   : > { %1270 = vst [vmem:[#allocation2 + $0x28] sm:$0xff] %v1254_v26   ;;  %v1259_v30 = vpack.c.bf16 %v780_v27, %v779_v23  ;;  %v782_v31 = vmul.f32 %v1527_v28, %v1971_v22 }
 0x294   : > { %1271 = vst [vmem:[#allocation2 + $0x30] sm:$0xff] %v1259_v30   ;;  %v1264_v32 = vpack.c.bf16 %v782_v31, %v781_v29 }
 0x296   : > { %1272 = vst [vmem:[#allocation2 + $0x38] sm:$0xff] %v1264_v32  }
 0x297 PF: > { %p1204_p2 = scmp.ne.s32.totalorder %s1796_s19, 2 }
 0x299   : > { %866 = sbr.rel (%p1204_p2) target bundleno = 1021 (0x3fd), region = 60 }
 0x29e   : > { %v867_v33 = vlaneseq }
 0x2a0   : > { %v868_v34 = vand.u32 127, %v867_v33 }
 0x2a2   : > { %vm869_vm0 = vcmp.lt.s32.totalorder %v868_v34, 4 }
 0x2a3   : > { %v870_v35 = vsel %vm869_vm0, %v1945_v60, -1e+30  ;;  %v872_v36 = vsel %vm869_vm0, %v1943_v58, -1e+30  ;;  %v871_v37 = vsel %vm869_vm0, %v1949_v0, -1e+30 }
 0x2a4   : > { %886 = vmax.xlane.f32.xlu0 %v870_v35  ;;  %890 = vmax.xlane.f32.xlu1 %v872_v36  ;;  %v873_v38 = vsel %vm869_vm0, %v1947_v62, -1e+30  ;;  %v874_v39 = vsel %vm869_vm0, %v1953_v4, -1e+30  ;;  %v875_v40 = vsel %vm869_vm0, %v1957_v8, -1e+30 }
 0x2a5   : > { %v876_v58 = vsel %vm869_vm0, %v1951_v2, -1e+30  ;;  %v877_v60 = vsel %vm869_vm0, %v1955_v6, -1e+30  ;;  %v878_v62 = vsel %vm869_vm0, %v1961_v12, -1e+30 }
 0x2a6   : > { %v879_v0 = vsel %vm869_vm0, %v1965_v16, -1e+30  ;;  %v880_v4 = vsel %vm869_vm0, %v1959_v10, -1e+30  ;;  %v881_v8 = vsel %vm869_vm0, %v1963_v14, -1e+30 }
 0x2a7   : > { %v2035_v2 = vsel %vm869_vm0, %v1969_v20, -1e+30  ;;  %v2039_v6 = vsel %vm869_vm0, %v1973_v24, -1e+30  ;;  %v2045_v10 = vsel %vm869_vm0, %v1967_v18, -1e+30 }
 0x2a8   : > { %888 = vmax.xlane.f32.xlu0 %v871_v37  ;;  %892 = vmax.xlane.f32.xlu1 %v873_v38  ;;  %v2049_v12 = vsel %vm869_vm0, %v1971_v22, -1e+30 }
 0x2ac   : > { %894 = vmax.xlane.f32.xlu0 %v874_v39  ;;  %896 = vmax.xlane.f32.xlu1 %v875_v40 }
 0x2b0   : > { %898 = vmax.xlane.f32.xlu0 %v876_v58  ;;  %900 = vmax.xlane.f32.xlu1 %v877_v60 }
 0x2b4   : > { %902 = vmax.xlane.f32.xlu0 %v878_v62  ;;  %904 = vmax.xlane.f32.xlu1 %v879_v0 }
 0x2b8   : > { %906 = vmax.xlane.f32.xlu0 %v880_v4  ;;  %908 = vmax.xlane.f32.xlu1 %v881_v8 }
 0x2bc   : > { %910 = vmax.xlane.f32.xlu0 %v2035_v2  ;;  %912 = vmax.xlane.f32.xlu1 %v2039_v6 }
 0x2c0   : > { %914 = vmax.xlane.f32.xlu0 %v2045_v10  ;;  %916 = vmax.xlane.f32.xlu1 %v2049_v12 }
 0x32d   : > { %v887_v14 = vpop.xlane.xlu0 %886  ;;  %v891_v16 = vpop.xlane.xlu1 %890 }
 0x32e   : > { %v2053_v20 = vsub.f32 %v870_v35, %v887_v14  ;;  %v2055_v24 = vsub.f32 %v872_v36, %v891_v16 }
 0x330   : > { %v934_v41 = vmul.f32 1.442695, %v2053_v20  ;;  %v938_v42 = vmul.f32 1.442695, %v2055_v24 }
 0x331   : > { %v889_v18 = vpop.xlane.xlu0 %888  ;;  %v893_v43 = vpop.xlane.xlu1 %892 }
 0x332   : > { %1528 = vpow2.f32 %v934_v41  ;;  %v2059_v44 = vsub.f32 %v871_v37, %v889_v18  ;;  %v2061_v22 = vsub.f32 %v873_v38, %v893_v43 }
 0x333   : > { %1530 = vpow2.f32 %v938_v42 }
 0x334   : > { %v936_v45 = vmul.f32 1.442695, %v2059_v44  ;;  %v940_v46 = vmul.f32 1.442695, %v2061_v22 }
 0x335   : > { %v895_v47 = vpop.xlane.xlu0 %894  ;;  %v897_v48 = vpop.xlane.xlu1 %896 }
 0x336   : > { %1532 = vpow2.f32 %v936_v45  ;;  %v2065_v49 = vsub.f32 %v874_v39, %v895_v47  ;;  %v2067_v50 = vsub.f32 %v875_v40, %v897_v48 }
 0x337   : > { %1534 = vpow2.f32 %v940_v46 }
 0x338   : > { %v942_v51 = vmul.f32 1.442695, %v2065_v49  ;;  %v944_v52 = vmul.f32 1.442695, %v2067_v50 }
 0x339   : > { %v899_v53 = vpop.xlane.xlu0 %898  ;;  %v901_v54 = vpop.xlane.xlu1 %900 }
 0x33a   : > { %1536 = vpow2.f32 %v942_v51  ;;  %v2071_v55 = vsub.f32 %v876_v58, %v899_v53  ;;  %v2073_v56 = vsub.f32 %v877_v60, %v901_v54 }
 0x33b   : > { %1538 = vpow2.f32 %v944_v52 }
 0x33c   : > { %v946_v57 = vmul.f32 1.442695, %v2071_v55  ;;  %v948_v59 = vmul.f32 1.442695, %v2073_v56 }
 0x33d   : > { %v903_v61 = vpop.xlane.xlu0 %902  ;;  %v905_v63 = vpop.xlane.xlu1 %904 }
 0x33e   : > { %1540 = vpow2.f32 %v946_v57  ;;  %v2077_v1 = vsub.f32 %v878_v62, %v903_v61  ;;  %v2079_v3 = vsub.f32 %v879_v0, %v905_v63 }
 0x33f   : > { %v1529_v5 = vpop.eup %1528  ;;  %1542 = vpow2.f32 %v948_v59 }
 0x340   : > { %v950_v7 = vmul.f32 1.442695, %v2077_v1  ;;  %966 = vadd.xlane.f32.xlu0 %v1529_v5  ;;  %v952_v9 = vmul.f32 1.442695, %v2079_v3  ;;  %v1531_v11 = vpop.eup %1530 }
 0x341   : > { %v907_v13 = vpop.xlane.xlu0 %906  ;;  %v909_v15 = vpop.xlane.xlu1 %908 }
 0x342   : > { %1544 = vpow2.f32 %v950_v7  ;;  %v2083_v17 = vsub.f32 %v880_v4, %v907_v13  ;;  %v2085_v19 = vsub.f32 %v881_v8, %v909_v15 }
 0x343   : > { %v1533_v21 = vpop.eup %1532  ;;  %1546 = vpow2.f32 %v952_v9 }
 0x344   : > { %v954_v23 = vmul.f32 1.442695, %v2083_v17  ;;  %970 = vadd.xlane.f32.xlu0 %v1531_v11  ;;  %968 = vadd.xlane.f32.xlu1 %v1533_v21  ;;  %v956_v25 = vmul.f32 1.442695, %v2085_v19  ;;  %v1535_v26 = vpop.eup %1534 }
 0x345   : > { %v911_v27 = vpop.xlane.xlu0 %910  ;;  %v913_v28 = vpop.xlane.xlu1 %912 }
 0x346   : > { %1548 = vpow2.f32 %v954_v23  ;;  %v2090_v29 = vsub.f32 %v2035_v2, %v911_v27  ;;  %v2093_v30 = vsub.f32 %v2039_v6, %v913_v28 }
 0x347   : > { %v1537_v31 = vpop.eup %1536  ;;  %1550 = vpow2.f32 %v956_v25 }
 0x348   : > { %v958_v32 = vmul.f32 1.442695, %v2090_v29  ;;  %972 = vadd.xlane.f32.xlu1 %v1535_v26  ;;  %974 = vadd.xlane.f32.xlu0 %v1537_v31  ;;  %v960_v33 = vmul.f32 1.442695, %v2093_v30  ;;  %v1539_v34 = vpop.eup %1538 }
 0x349   : > { %v915_v35 = vpop.xlane.xlu0 %914  ;;  %v917_v36 = vpop.xlane.xlu1 %916 }
 0x34a   : > { %1552 = vpow2.f32 %v958_v32  ;;  %v2098_v37 = vsub.f32 %v2045_v10, %v915_v35  ;;  %v2101_v38 = vsub.f32 %v2049_v12, %v917_v36 }
 0x34b   : > { %v1541_v39 = vpop.eup %1540  ;;  %1554 = vpow2.f32 %v960_v33 }
 0x34c   : > { %v962_v40 = vmul.f32 1.442695, %v2098_v37  ;;  %976 = vadd.xlane.f32.xlu1 %v1539_v34  ;;  %978 = vadd.xlane.f32.xlu0 %v1541_v39  ;;  %v964_v58 = vmul.f32 1.442695, %v2101_v38  ;;  %v1543_v60 = vpop.eup %1542 }
 0x34e   : > { %1556 = vpow2.f32 %v962_v40 }
 0x34f   : > { %v1545_v62 = vpop.eup %1544  ;;  %1558 = vpow2.f32 %v964_v58 }
 0x350   : > { %980 = vadd.xlane.f32.xlu1 %v1543_v60  ;;  %982 = vadd.xlane.f32.xlu0 %v1545_v62  ;;  %v1547_v0 = vpop.eup %1546 }
 0x353   : > { %v1549_v4 = vpop.eup %1548 }
 0x354   : > { %984 = vadd.xlane.f32.xlu1 %v1547_v0  ;;  %986 = vadd.xlane.f32.xlu0 %v1549_v4  ;;  %v1551_v8 = vpop.eup %1550 }
 0x357   : > { %v1553_v2 = vpop.eup %1552 }
 0x358   : > { %988 = vadd.xlane.f32.xlu1 %v1551_v8  ;;  %990 = vadd.xlane.f32.xlu0 %v1553_v2  ;;  %v1555_v6 = vpop.eup %1554 }
 0x35b   : > { %v1557_v10 = vpop.eup %1556 }
 0x35c   : > { %992 = vadd.xlane.f32.xlu1 %v1555_v6  ;;  %994 = vadd.xlane.f32.xlu0 %v1557_v10  ;;  %v1559_v12 = vpop.eup %1558 }
 0x360   : > { %996 = vadd.xlane.f32.xlu1 %v1559_v12 }
 0x3c9   : > { %v967_v14 = vpop.xlane.xlu0 %966 }
 0x3ca   : > { %1560 = vlog2.f32 %v967_v14 }
 0x3cd   : > { %v969_v16 = vpop.xlane.xlu1 %968  ;;  %v971_v41 = vpop.xlane.xlu0 %970 }
 0x3ce   : > { %1562 = vlog2.f32 %v969_v16 }
 0x3cf   : > { %1564 = vlog2.f32 %v971_v41 }
 0x3d1   : > { %v973_v42 = vpop.xlane.xlu1 %972  ;;  %v975_v18 = vpop.xlane.xlu0 %974 }
 0x3d2   : > { %1566 = vlog2.f32 %v973_v42 }
 0x3d3   : > { %1568 = vlog2.f32 %v975_v18 }
 0x3d5   : > { %v977_v43 = vpop.xlane.xlu1 %976  ;;  %v979_v45 = vpop.xlane.xlu0 %978 }
 0x3d6   : > { %1570 = vlog2.f32 %v977_v43 }
 0x3d7   : > { %v1561_v46 = vpop.eup %1560  ;;  %1572 = vlog2.f32 %v979_v45 }
 0x3d8   : > { %v999_v47 = vmul.f32 0.6931472, %v1561_v46 }
 0x3d9   : > { %v981_v48 = vpop.xlane.xlu1 %980  ;;  %v983_v51 = vpop.xlane.xlu0 %982 }
 0x3da   : > { %v1030_v52 = vsub.f32 %v2053_v20, %v999_v47  ;;  %1574 = vlog2.f32 %v981_v48 }
 0x3db   : > { %v1563_v53 = vpop.eup %1562  ;;  %1576 = vlog2.f32 %v983_v51 }
 0x3dc   : > { %v1565_v54 = vpop.eup %1564  ;;  %1046 = vst [vmem:[#allocation9] sm:$0xff] %v1030_v52  ;;  %v1001_v57 = vmul.f32 0.6931472, %v1563_v53 }
 0x3dd   : > { %v1003_v59 = vmul.f32 0.6931472, %v1565_v54  ;;  %v985_v61 = vpop.xlane.xlu1 %984  ;;  %v987_v63 = vpop.xlane.xlu0 %986 }
 0x3de   : > { %v1031_v5 = vsub.f32 %v2059_v44, %v1001_v57  ;;  %1578 = vlog2.f32 %v985_v61 }
 0x3df   : > { %v1567_v7 = vpop.eup %1566  ;;  %v1032_v9 = vsub.f32 %v2055_v24, %v1003_v59  ;;  %1580 = vlog2.f32 %v987_v63 }
 0x3e0   : > { %v1569_v11 = vpop.eup %1568  ;;  %1047 = vst [vmem:[#allocation9 + $0x8] sm:$0xff] %v1031_v5  ;;  %v1005_v13 = vmul.f32 0.6931472, %v1567_v7 }
 0x3e1   : > { %1048 = vst [vmem:[#allocation9 + $0x10] sm:$0xff] %v1032_v9  ;;  %v1007_v20 = vmul.f32 0.6931472, %v1569_v11  ;;  %v989_v15 = vpop.xlane.xlu1 %988  ;;  %v991_v21 = vpop.xlane.xlu0 %990 }
 0x3e2   : > { %v1033_v23 = vsub.f32 %v2061_v22, %v1005_v13  ;;  %1582 = vlog2.f32 %v989_v15 }
 0x3e3   : > { %v1571_v25 = vpop.eup %1570  ;;  %v1034_v26 = vsub.f32 %v2065_v49, %v1007_v20  ;;  %1584 = vlog2.f32 %v991_v21 }
 0x3e4   : > { %v1573_v44 = vpop.eup %1572  ;;  %1049 = vst [vmem:[#allocation9 + $0x18] sm:$0xff] %v1033_v23  ;;  %v1009_v27 = vmul.f32 0.6931472, %v1571_v25 }
 0x3e5   : > { %1050 = vst [vmem:[#allocation9 + $0x20] sm:$0xff] %v1034_v26  ;;  %v1011_v24 = vmul.f32 0.6931472, %v1573_v44  ;;  %v993_v28 = vpop.xlane.xlu1 %992  ;;  %v995_v31 = vpop.xlane.xlu0 %994 }
 0x3e6   : > { %v1035_v32 = vsub.f32 %v2067_v50, %v1009_v27  ;;  %1586 = vlog2.f32 %v993_v28 }
 0x3e7   : > { %v1575_v33 = vpop.eup %1574  ;;  %v1036_v34 = vsub.f32 %v2071_v55, %v1011_v24  ;;  %1588 = vlog2.f32 %v995_v31 }
 0x3e8   : > { %v1577_v22 = vpop.eup %1576  ;;  %1051 = vst [vmem:[#allocation9 + $0x28] sm:$0xff] %v1035_v32  ;;  %v1013_v35 = vmul.f32 0.6931472, %v1575_v33 }
 0x3e9   : > { %1052 = vst [vmem:[#allocation9 + $0x30] sm:$0xff] %v1036_v34  ;;  %v1015_v49 = vmul.f32 0.6931472, %v1577_v22  ;;  %v997_v36 = vpop.xlane.xlu1 %996 }
 0x3ea   : > { %v1037_v39 = vsub.f32 %v2073_v56, %v1013_v35  ;;  %1590 = vlog2.f32 %v997_v36 }
 0x3eb   : > { %v1579_v40 = vpop.eup %1578  ;;  %v1038_v58 = vsub.f32 %v2077_v1, %v1015_v49 }
 0x3ec   : > { %v1581_v60 = vpop.eup %1580  ;;  %1053 = vst [vmem:[#allocation9 + $0x38] sm:$0xff] %v1037_v39  ;;  %v1017_v50 = vmul.f32 0.6931472, %v1579_v40 }
 0x3ed   : > { %1054 = vst [vmem:[#allocation9 + $0x40] sm:$0xff] %v1038_v58  ;;  %v1019_v62 = vmul.f32 0.6931472, %v1581_v60 }
 0x3ee   : > { %v1039_v55 = vsub.f32 %v2079_v3, %v1017_v50 }
 0x3ef   : > { %v1583_v0 = vpop.eup %1582  ;;  %v1040_v4 = vsub.f32 %v2083_v17, %v1019_v62 }
 0x3f0   : > { %v1585_v8 = vpop.eup %1584  ;;  %1055 = vst [vmem:[#allocation9 + $0x48] sm:$0xff] %v1039_v55  ;;  %v1021_v2 = vmul.f32 0.6931472, %v1583_v0 }
 0x3f1   : > { %1056 = vst [vmem:[#allocation9 + $0x50] sm:$0xff] %v1040_v4  ;;  %v1023_v6 = vmul.f32 0.6931472, %v1585_v8 }
 0x3f2   : > { %v1041_v56 = vsub.f32 %v2085_v19, %v1021_v2 }
 0x3f3   : > { %v1587_v10 = vpop.eup %1586  ;;  %v1042_v1 = vsub.f32 %v2090_v29, %v1023_v6 }
 0x3f4   : > { %v1589_v12 = vpop.eup %1588  ;;  %1057 = vst [vmem:[#allocation9 + $0x58] sm:$0xff] %v1041_v56  ;;  %v1025_v14 = vmul.f32 0.6931472, %v1587_v10 }
 0x3f5   : > { %1058 = vst [vmem:[#allocation9 + $0x60] sm:$0xff] %v1042_v1  ;;  %v1027_v16 = vmul.f32 0.6931472, %v1589_v12 }
 0x3f6   : > { %v1043_v3 = vsub.f32 %v2093_v30, %v1025_v14 }
 0x3f7   : > { %v1591_v41 = vpop.eup %1590  ;;  %v1044_v17 = vsub.f32 %v2098_v37, %v1027_v16 }
 0x3f8   : > { %1059 = vst [vmem:[#allocation9 + $0x68] sm:$0xff] %v1043_v3  ;;  %v1029_v42 = vmul.f32 0.6931472, %v1591_v41 }
 0x3f9   : > { %1060 = vst [vmem:[#allocation9 + $0x70] sm:$0xff] %v1044_v17 }
 0x3fa   : > { %v1045_v18 = vsub.f32 %v2101_v38, %v1029_v42 }
 0x3fc   : > { %1061 = vst [vmem:[#allocation9 + $0x78] sm:$0xff] %v1045_v18 }
 0x3fd PF: > { %p1399_p3 = scmp.eq.s32.totalorder %s1796_s19, 2  ;;  %s1749_s10 = smov [#allocation9]  }
 0x3fe   : > { %s1068_s18 = sshll.u32 %s1749_s10, 4  ;;  %s1069_s18 = int_to_ptr.vmem [resolvable:$true] %s1068_s18 }
 0x3ff   : > { %s1672_s11 = scalar_lea.vmem %s1069_s18, 2048  ;;  %p1679_p12 = scmp.lt.s32.totalorder %s1069_s18, %s1069_s18 }
 0x400   : > { %p1673_p6 = scmp.ne.s32.totalorder %s1069_s18, %s1672_s11  ;;  %p1680_p11 = scmp.lt.s32.totalorder %s1672_s11, %s1672_s11 }
 0x402   : > { %p1674_p1 = pnand %p1673_p6, %p1399_p3  ;;  %p1681_p4 = por %p1680_p11, %p1679_p12 }
 0x404   : > { %p1675_p7 = pneg %p1674_p1 }
 0x406   : > { %p1682_p8 = pnand %p1681_p4, %p1675_p7 }
 0x408   : > { %1685 = shalt.err (!%p1682_p8)
}
 0x409   : > { %s1750_s13 = smov 128   ;;  %s1751_s14 = smov 8  }
 0x40a   : > { %1380 = dma.vmem_to_hbm [thread:$0]  (%p1399_p3), %s1069_s18, 2048, %s2150_s4, [#allocation5], %s1750_s13, %s1750_s13, %s1751_s14  }
 0x40b   : > { %1725 = dma.done.wait (%p1399_p3), [#allocation5], 2048  }
 0x40c   : > { %1727 = vsyncadd (%p1399_p3), [#allocation5], 4294965248 }
 0x40d PF: > { %p14_p10 = scmp.ge.s32.totalorder %s1799_s20, 5   ;;  %s2166_s15 = smov %s1734_s16 }
 0x40e   : > { %s2167_s16 = smov %s1738_s17  ;;  %s2168_s17 = smov %s1809_s23 }
 0x40f   : > { %s2169_s18 = smov %s1799_s20  ;;  %16 = sbr.rel (!%p14_p10) target bundleno = 4 (0x4), region = 95 }
 0x414   :  { %1084 = vsyncpa [#allocation4], 1 }
 0x415   :  { %1086 = vsyncpa [#allocation4 + $0x1], 1 }
 0x416   :  { %1087 = vsyncpa [#allocation7], 1 }
 0x417   :  { %1088 = vsyncpa [#allocation5], 1 }
 0x418   :  { %1090 = vsyncpa [#allocation5 + $0x1], 1 }

</bundles_post_ra>
